<compile_context>
chip_gen: v5e
topology: v5e:2x2
jax: 0.10.0
libtpu: 0.0.40
codegen_flags: <defaults>
</compile_context>

<pallas_src>
import jax
import jax.numpy as jnp
from jax.experimental import pallas as pl
from jax.experimental.pallas import tpu as pltpu

INPUT_SIZE = 4
OUTPUT_SIZE = 2

TILE_B_MAX = 512          # lanes (batch rows) per grid step; multiple of 128


def _round_up(n, m):
    return ((n + m - 1) // m) * m


def logistic_kernel(xt_ref, wb_ref, o_ref):
    # xt_ref: (INPUT_SIZE, TILE_B)        f32, VMEM  (batch on the lane axis)
    # wb_ref: (OUTPUT_SIZE, INPUT_SIZE+1) f32, SMEM  (last column = bias)
    # o_ref : (OUTPUT_SIZE, TILE_B)       f32, VMEM
    x = xt_ref[...]                                     # (INPUT_SIZE, TILE_B)
    for o in range(OUTPUT_SIZE):                        # unrolled (2 outputs)
        logits = wb_ref[o, INPUT_SIZE]                  # bias scalar from SMEM
        for k in range(INPUT_SIZE):                     # unrolled (4) VPU madds
            logits = logits + wb_ref[o, k] * x[k:k + 1, :]
        o_ref[o:o + 1, :] = jax.nn.sigmoid(logits)      # EUP transcendental


def logistic_net_forward(x, weight, bias):
    """x: (B, INPUT_SIZE); weight: (OUTPUT_SIZE, INPUT_SIZE) (PyTorch layout);
    bias: (OUTPUT_SIZE,).  Returns (B, OUTPUT_SIZE) float32."""
    B = x.shape[0]

    # mirrors torch `x.float()`; no-op when x is already f32
    xt = x.astype(jnp.float32).T                        # (INPUT_SIZE, B)

    tile_b = min(TILE_B_MAX, _round_up(B, 128))
    b_pad = _round_up(B, tile_b)
    if b_pad != B:
        xt = jnp.pad(xt, ((0, 0), (0, b_pad - B)))

    # fuse bias into the weight tile: (OUTPUT_SIZE, INPUT_SIZE + 1)
    wb = jnp.concatenate(
        [weight.astype(jnp.float32),
         bias.astype(jnp.float32).reshape(OUTPUT_SIZE, 1)],
        axis=1)

    out_t = pl.pallas_call(
        logistic_kernel,
        out_shape=jax.ShapeDtypeStruct((OUTPUT_SIZE, b_pad), jnp.float32),
        grid=(b_pad // tile_b,),
        in_specs=[
            pl.BlockSpec((INPUT_SIZE, tile_b), lambda i: (0, i)),   # streamed x^T tile
            pl.BlockSpec(memory_space=pltpu.MemorySpace.SMEM),      # resident weights+bias
        ],
        out_specs=pl.BlockSpec((OUTPUT_SIZE, tile_b), lambda i: (0, i)),
        compiler_params=pltpu.CompilerParams(
            dimension_semantics=("parallel",)),
    )(xt, wb)

    return out_t[:, :B].T                               # (B, OUTPUT_SIZE)


if __name__ == "__main__":
    key = jax.random.PRNGKey(0)
    kx, kw, kb = jax.random.split(key, 3)

    batch = 8
    # Deterministic synthetic parameters (matches nn.Linear(4, 2) shapes).
    x = jax.random.normal(kx, (batch, INPUT_SIZE), dtype=jnp.float32)
    weight = jax.random.normal(kw, (OUTPUT_SIZE, INPUT_SIZE), dtype=jnp.float32) * 0.5
    bias = jax.random.normal(kb, (OUTPUT_SIZE,), dtype=jnp.float32) * 0.1

    out = jax.block_until_ready(logistic_net_forward(x, weight, bias))
    ref = jax.nn.sigmoid(x @ weight.T + bias)
    assert out.shape == (batch, OUTPUT_SIZE)
    assert jnp.allclose(out, ref, atol=1e-5), "mismatch vs reference"

    # Extra correctness check exercising the multi-step (pipelined) grid path:
    # batch=1200 pads to 1536 lanes -> grid=(3,) with TILE_B=512.
    batch2 = 1200
    x2 = jax.random.normal(kx, (batch2, INPUT_SIZE), dtype=jnp.float32)
    out2 = jax.block_until_ready(logistic_net_forward(x2, weight, bias))
    ref2 = jax.nn.sigmoid(x2 @ weight.T + bias)
    assert out2.shape == (batch2, OUTPUT_SIZE)
    assert jnp.allclose(out2, ref2, atol=1e-5), "mismatch vs reference (tiled)"

    print("KERNEL_OK")
</pallas_src>

<mosaic_0001>
module attributes {stable_mosaic.version = 11 : i64} {
  func.func @logistic_kernel(%arg0: i32, %arg1: memref<4x128xf32, #tpu.memory_space<vmem>>, %arg2: memref<2x5xf32, #tpu.memory_space<smem>>, %arg3: memref<2x128xf32, #tpu.memory_space<vmem>>) attributes {dimension_semantics = [#tpu.dimension_semantics<parallel>], iteration_bounds = array<i64: 1>, scalar_prefetch = 0 : i64, scratch_operands = 0 : i64, tpu.core_type = #tpu.core_type<tc>, window_params = [{transform_indices = @transform_0, window_bounds = array<i64: 4, 128>}, {transform_indices = @transform_1, window_bounds = array<i64: 2, 5>}, {transform_indices = @transform_2, window_bounds = array<i64: 2, 128>}]} {
    %c0 = arith.constant 0 : index
    %c0_0 = arith.constant 0 : index
    %0 = vector.load %arg1[%c0, %c0_0] : memref<4x128xf32, #tpu.memory_space<vmem>>, vector<4x128xf32>
    %c0_1 = arith.constant 0 : index
    %c4 = arith.constant 4 : index
    %1 = memref.load %arg2[%c0_1, %c4] : memref<2x5xf32, #tpu.memory_space<smem>>
    %c0_2 = arith.constant 0 : index
    %c0_3 = arith.constant 0 : index
    %2 = memref.load %arg2[%c0_2, %c0_3] : memref<2x5xf32, #tpu.memory_space<smem>>
    %3 = vector.extract_strided_slice %0 {offsets = [0, 0], sizes = [1, 128], strides = [1, 1]} : vector<4x128xf32> to vector<1x128xf32>
    %4 = vector.broadcast %2 : f32 to vector<1x128xf32>
    %5 = arith.mulf %4, %3 : vector<1x128xf32>
    %6 = vector.broadcast %1 : f32 to vector<1x128xf32>
    %7 = arith.addf %6, %5 : vector<1x128xf32>
    %c0_4 = arith.constant 0 : index
    %c1 = arith.constant 1 : index
    %8 = memref.load %arg2[%c0_4, %c1] : memref<2x5xf32, #tpu.memory_space<smem>>
    %9 = vector.extract_strided_slice %0 {offsets = [1, 0], sizes = [1, 128], strides = [1, 1]} : vector<4x128xf32> to vector<1x128xf32>
    %10 = vector.broadcast %8 : f32 to vector<1x128xf32>
    %11 = arith.mulf %10, %9 : vector<1x128xf32>
    %12 = arith.addf %7, %11 : vector<1x128xf32>
    %c0_5 = arith.constant 0 : index
    %c2 = arith.constant 2 : index
    %13 = memref.load %arg2[%c0_5, %c2] : memref<2x5xf32, #tpu.memory_space<smem>>
    %14 = vector.extract_strided_slice %0 {offsets = [2, 0], sizes = [1, 128], strides = [1, 1]} : vector<4x128xf32> to vector<1x128xf32>
    %15 = vector.broadcast %13 : f32 to vector<1x128xf32>
    %16 = arith.mulf %15, %14 : vector<1x128xf32>
    %17 = arith.addf %12, %16 : vector<1x128xf32>
    %c0_6 = arith.constant 0 : index
    %c3 = arith.constant 3 : index
    %18 = memref.load %arg2[%c0_6, %c3] : memref<2x5xf32, #tpu.memory_space<smem>>
    %19 = vector.extract_strided_slice %0 {offsets = [3, 0], sizes = [1, 128], strides = [1, 1]} : vector<4x128xf32> to vector<1x128xf32>
    %20 = vector.broadcast %18 : f32 to vector<1x128xf32>
    %21 = arith.mulf %20, %19 : vector<1x128xf32>
    %22 = arith.addf %17, %21 : vector<1x128xf32>
    %23 = arith.negf %22 : vector<1x128xf32>
    %24 = math.exp %23 : vector<1x128xf32>
    %cst = arith.constant 1.000000e+00 : f32
    %25 = vector.broadcast %cst : f32 to vector<1x128xf32>
    %26 = arith.addf %25, %24 : vector<1x128xf32>
    %27 = arith.divf %25, %26 : vector<1x128xf32>
    %c0_7 = arith.constant 0 : index
    %c0_8 = arith.constant 0 : index
    %28 = vector.load %arg3[%c0_7, %c0_8] : memref<2x128xf32, #tpu.memory_space<vmem>>, vector<1x128xf32>
    tpu.vector_store %arg3[%c0_7, %c0_8], %27 {strides = array<i32>} : memref<2x128xf32, #tpu.memory_space<vmem>>, vector<1x128xf32>,
    %c1_9 = arith.constant 1 : index
    %c4_10 = arith.constant 4 : index
    %29 = memref.load %arg2[%c1_9, %c4_10] : memref<2x5xf32, #tpu.memory_space<smem>>
    %c1_11 = arith.constant 1 : index
    %c0_12 = arith.constant 0 : index
    %30 = memref.load %arg2[%c1_11, %c0_12] : memref<2x5xf32, #tpu.memory_space<smem>>
    %31 = vector.extract_strided_slice %0 {offsets = [0, 0], sizes = [1, 128], strides = [1, 1]} : vector<4x128xf32> to vector<1x128xf32>
    %32 = vector.broadcast %30 : f32 to vector<1x128xf32>
    %33 = arith.mulf %32, %31 : vector<1x128xf32>
    %34 = vector.broadcast %29 : f32 to vector<1x128xf32>
    %35 = arith.addf %34, %33 : vector<1x128xf32>
    %c1_13 = arith.constant 1 : index
    %c1_14 = arith.constant 1 : index
    %36 = memref.load %arg2[%c1_13, %c1_14] : memref<2x5xf32, #tpu.memory_space<smem>>
    %37 = vector.extract_strided_slice %0 {offsets = [1, 0], sizes = [1, 128], strides = [1, 1]} : vector<4x128xf32> to vector<1x128xf32>
    %38 = vector.broadcast %36 : f32 to vector<1x128xf32>
    %39 = arith.mulf %38, %37 : vector<1x128xf32>
    %40 = arith.addf %35, %39 : vector<1x128xf32>
    %c1_15 = arith.constant 1 : index
    %c2_16 = arith.constant 2 : index
    %41 = memref.load %arg2[%c1_15, %c2_16] : memref<2x5xf32, #tpu.memory_space<smem>>
    %42 = vector.extract_strided_slice %0 {offsets = [2, 0], sizes = [1, 128], strides = [1, 1]} : vector<4x128xf32> to vector<1x128xf32>
    %43 = vector.broadcast %41 : f32 to vector<1x128xf32>
    %44 = arith.mulf %43, %42 : vector<1x128xf32>
    %45 = arith.addf %40, %44 : vector<1x128xf32>
    %c1_17 = arith.constant 1 : index
    %c3_18 = arith.constant 3 : index
    %46 = memref.load %arg2[%c1_17, %c3_18] : memref<2x5xf32, #tpu.memory_space<smem>>
    %47 = vector.extract_strided_slice %0 {offsets = [3, 0], sizes = [1, 128], strides = [1, 1]} : vector<4x128xf32> to vector<1x128xf32>
    %48 = vector.broadcast %46 : f32 to vector<1x128xf32>
    %49 = arith.mulf %48, %47 : vector<1x128xf32>
    %50 = arith.addf %45, %49 : vector<1x128xf32>
    %51 = arith.negf %50 : vector<1x128xf32>
    %52 = math.exp %51 : vector<1x128xf32>
    %cst_19 = arith.constant 1.000000e+00 : f32
    %53 = vector.broadcast %cst_19 : f32 to vector<1x128xf32>
    %54 = arith.addf %53, %52 : vector<1x128xf32>
    %55 = arith.divf %53, %54 : vector<1x128xf32>
    %c1_20 = arith.constant 1 : index
    %c0_21 = arith.constant 0 : index
    %56 = vector.load %arg3[%c1_20, %c0_21] : memref<2x128xf32, #tpu.memory_space<vmem>>, vector<1x128xf32>
    tpu.vector_store %arg3[%c1_20, %c0_21], %55 {strides = array<i32>} : memref<2x128xf32, #tpu.memory_space<vmem>>, vector<1x128xf32>,
    return
  }
  func.func @transform_0(%arg0: i32) -> (i32, i32) {
    %c0_i32 = arith.constant 0 : i32
    %c0_i32_0 = arith.constant 0 : i32
    return %c0_i32, %arg0 : i32, i32
  }
  func.func @transform_1(%arg0: i32) -> (i32, i32) {
    %c0_i32 = arith.constant 0 : i32
    %c0_i32_0 = arith.constant 0 : i32
    %c0_i32_1 = arith.constant 0 : i32
    return %c0_i32, %c0_i32_0 : i32, i32
  }
  func.func @transform_2(%arg0: i32) -> (i32, i32) {
    %c0_i32 = arith.constant 0 : i32
    %c0_i32_0 = arith.constant 0 : i32
    return %c0_i32, %arg0 : i32, i32
  }
}

</mosaic_0001>

<bundles_post_ra>
// kernel: tpu_custom_call.1
= control target key start
LH: loop header
LB: loop body
LE: loop exit
PB: predicated region body
PF: predicated region fallthrough
CT: control target
= control target key end

     0   :  { %7 = vsyncpa [#allocation3], 0  ;;  %s267_s0 = inlined_call_operand.hbm [shape: f32[4,128], index: 0, kind: input, shape index: {}]   ;;  %s268_s1 = inlined_call_operand.hbm [shape: f32[2,5], index: 1, kind: input, shape index: {}]   ;;  %s269_s2 = inlined_call_operand.hbm [shape: f32[2,128], index: 2, kind: output, shape index: {}]  }
   0x1   :  { %8 = vsyncpa [#allocation5], 0 }
   0x2   :  { %9 = vsyncpa [#allocation4], 0  ;;  %s15_s11 = sshll.u32 %s267_s0, 4  ;;  %s240_s12 = smov [#allocation2]   ;;  %s16_s11 = int_to_ptr.hbm [resolvable:$true] %s15_s11 }
   0x3   :  { %s17_s13 = sshll.u32 %s240_s12, 4  ;;  %s26_s16 = sshll.u32 %s268_s1, 4  ;;  %s18_s13 = int_to_ptr.vmem [resolvable:$true] %s17_s13  ;;  %s27_s16 = int_to_ptr.hbm [resolvable:$true] %s26_s16 }
   0x4   :  { %20 = dma.hbm_to_vmem [thread:$0]  %s16_s11, 64, %s18_s13, [#allocation3]  }
   0x5   :  { %s241_s17 = smov [#allocation6]  }
   0x6   :  { %29 = dma.hbm_to_smem %s27_s16, 32, %s241_s17, [#allocation5]  }
   0x7   :  { %234 = dma.done.wait [#allocation3], 64  }
   0x8   :  { %235 = vsyncadd [#allocation3], 4294967232 }
   0x9   :  { %236 = dma.done.wait [#allocation5], 32  }
   0xa   :  { %237 = vsyncadd [#allocation5], 4294967264 }
   0xb   :  { %38 = sfence }
   0xc   :  { %s152_s18 = sld [smem:[#allocation6 + $0x4]]  ;;  %v39_v0 = vld [vmem:[#allocation2] sm:$0xf]  ;;  %s242_s26 = smov [#allocation7]  }
   0xd   :  { %s41_s19 = sld [smem:[#allocation6]]  ;;  %s139_s27 = sshll.u32 %s242_s26, 4  ;;  %s140_s27 = int_to_ptr.vmem [resolvable:$true] %s139_s27 }
   0xe   :  { %s153_s0 = sld [smem:[#allocation6 + $0x1]]  ;;  %s141_s30 = sshll.u32 %s269_s2, 4  ;;  %s142_s30 = int_to_ptr.hbm [resolvable:$true] %s141_s30 }
   0xf   :  { %s154_s20 = sld [smem:[#allocation6 + $0x2]] }
  0x10   :  { %s155_s21 = sld [smem:[#allocation6 + $0x3]] }
  0x11   :  { %s157_s22 = sld [smem:[#allocation6 + $0x84]] }
  0x12   :  { %s158_s23 = sld [smem:[#allocation6 + $0x80]]  ;;  %v44_v2 = vstv %s152_s18 }
  0x13   :  { %v42_v1 = vstv %s41_s19  ;;  %s159_s1 = sld [smem:[#allocation6 + $0x81]] }
  0x14   :  { %v43_v3 = vmul.f32 %v42_v1, %v39_v0  ;;  %v47_v4 = vstv %s153_s0  ;;  %s160_s24 = sld [smem:[#allocation6 + $0x82]] }
  0x15   :  { %v48_v5 = vmul.f32 %v47_v4, %v39_v0  ;;  %v54_v6 = vstv %s154_s20  ;;  %s161_s25 = sld [smem:[#allocation6 + $0x83]] }
  0x16   :  { %v45_v7 = vadd.f32 %v44_v2, %v43_v3  ;;  %v55_v8 = vmul.f32 %v54_v6, %v39_v0  ;;  %v61_v9 = vstv %s155_s21 }
  0x17   :  { %v50_v10 = vrot.slane %v48_v5, 1  ;;  %v62_v11 = vmul.f32 %v61_v9, %v39_v0  ;;  %v91_v14 = vstv %s157_s22 }
  0x18   :  { %v57_v12 = vrot.slane %v55_v8, 2  ;;  %v89_v13 = vstv %s158_s23 }
  0x19   :  { %v52_v15 = vadd.f32 %v50_v10, %v45_v7  ;;  %v64_v16 = vrot.slane %v62_v11, 3  ;;  %v90_v17 = vmul.f32 %v89_v13, %v39_v0  ;;  %v94_v18 = vstv %s159_s1 }
  0x1a   :  { %v95_v19 = vmul.f32 %v94_v18, %v39_v0  ;;  %v101_v20 = vstv %s160_s24 }
  0x1b   :  { %v59_v21 = vadd.f32 %v57_v12, %v52_v15  ;;  %v92_v22 = vadd.f32 %v91_v14, %v90_v17  ;;  %v102_v23 = vmul.f32 %v101_v20, %v39_v0  ;;  %v108_v24 = vstv %s161_s25 }
  0x1c   :  { %v97_v25 = vrot.slane %v95_v19, 1  ;;  %v109_v26 = vmul.f32 %v108_v24, %v39_v0 }
  0x1d   :  { %v66_v27 = vadd.f32 %v64_v16, %v59_v21  ;;  %v104_v28 = vrot.slane %v102_v23, 2 }
  0x1e   :  { %v99_v29 = vadd.f32 %v97_v25, %v92_v22  ;;  %v111_v30 = vrot.slane %v109_v26, 3 }
  0x1f   :  { %v156_v31 = vmul.f32 -1.442695, %v66_v27 }
  0x20   :  { %v106_v32 = vadd.f32 %v104_v28, %v99_v29 }
  0x21   :  { %166 = vpow2.f32 %v156_v31 }
  0x22   :  { %v113_v33 = vadd.f32 %v111_v30, %v106_v32 }
  0x24   :  { %v162_v34 = vmul.f32 -1.442695, %v113_v33 }
  0x26   :  { %168 = vpow2.f32 %v162_v34 }
  0x27   :  { %v167_v35 = vpop.eup %166 }
  0x28   :  { %v70_v36 = vadd.f32 1.0, %v167_v35 }
  0x2a   :  { %170 = vrcp.f32 %v70_v36  ;;  %v82_v41 = vand.u32 2147483648, %v70_v36  ;;  %vm76_vm0 = vweird.f32 %v70_v36  ;;  %v80_v43 = vand.u32 2147483647, %v70_v36 }
  0x2c   :  { %v169_v37 = vpop.eup %168  ;;  %v83_v46 = vor.u32 1.1754944e-38, %v82_v41  ;;  %vm81_vm3 = vcmp.eq.f32.partialorder %v80_v43, 8.507059e+37 }
  0x2d   :  { %v117_v38 = vadd.f32 1.0, %v169_v37 }
  0x2f   :  { %172 = vrcp.f32 %v117_v38  ;;  %v129_v49 = vand.u32 2147483648, %v117_v38  ;;  %vm123_vm4 = vweird.f32 %v117_v38  ;;  %v127_v51 = vand.u32 2147483647, %v117_v38 }
  0x30   :  { %v171_v39 = vpop.eup %170 }
  0x31   :  { %v72_v40 = vmul.f32 %v171_v39, %v70_v36  ;;  %vm77_vm1 = vweird.f32 %v171_v39  ;;  %v130_v55 = vor.u32 1.1754944e-38, %v129_v49  ;;  %vm128_vm7 = vcmp.eq.f32.partialorder %v127_v51, 8.507059e+37 }
  0x32   :  { %vm78_vm2 = vmor %vm76_vm0, %vm77_vm1 }
  0x33   :  { %v73_v42 = vsub.f32 1.0, %v72_v40 }
  0x35   :  { %v173_v44 = vpop.eup %172  ;;  %v74_v45 = vmul.f32 %v171_v39, %v73_v42 }
  0x36   :  { %v119_v47 = vmul.f32 %v173_v44, %v117_v38  ;;  %vm124_vm5 = vweird.f32 %v173_v44 }
  0x37   :  { %v75_v48 = vadd.f32 %v171_v39, %v74_v45  ;;  %vm125_vm6 = vmor %vm123_vm4, %vm124_vm5 }
  0x38   :  { %v120_v50 = vsub.f32 1.0, %v119_v47 }
  0x39   :  { %v79_v52 = vsel %vm78_vm2, %v171_v39, %v75_v48 }
  0x3a   :  { %v84_v53 = vsel %vm81_vm3, %v83_v46, %v79_v52  ;;  %v121_v54 = vmul.f32 %v173_v44, %v120_v50 }
  0x3b   :  { %86 = vst [vmem:[#allocation7] sm:$0x1] %v84_v53 }
  0x3c   :  { %v122_v56 = vadd.f32 %v173_v44, %v121_v54 }
  0x3e   :  { %v126_v57 = vsel %vm125_vm6, %v173_v44, %v122_v56 }
  0x3f   :  { %v131_v58 = vsel %vm128_vm7, %v130_v55, %v126_v57 }
  0x40   :  { %133 = vst [vmem:[#allocation7 + $0x1] sm:$0x1] %v131_v58 }
  0x41   :  { %144 = dma.vmem_to_hbm [thread:$0]  %s140_s27, 32, %s142_s30, [#allocation4]  }
  0x42   :  { %238 = dma.done.wait [#allocation4], 32  }
  0x43   :  { %239 = vsyncadd [#allocation4], 4294967264 }
  0x44   :  { %149 = vsyncpa [#allocation3], 1 }
  0x45   :  { %150 = vsyncpa [#allocation4], 1 }
  0x46   :  { %151 = vsyncpa [#allocation5], 1 }

</bundles_post_ra>
